<compile_context>
chip_gen: v7x
topology: tpu7x:2x2x1
jax: 0.10.0
libtpu: 0.0.40
codegen_flags: <defaults>
</compile_context>

<pallas_src>
import functools

import jax
import jax.numpy as jnp
from jax import lax
from jax.experimental import pallas as pl
from jax.experimental.pallas import tpu as pltpu


def _round_up(v, m):
    return ((v + m - 1) // m) * m


def _block_vq_kernel(x_ref, ebd_ref, ecat_ref, e2_ref,
                     codes_ref, inds_ref, commit_ref,
                     *, num_blocks, codebook_size, block_dim, bn_tile, bn_valid):
    """One grid step == one tile of BN_TILE tokens, ALL VQ blocks fused.

    x_ref:      (BN_TILE, D)            activations, D = num_blocks * d (lane-dense)
    ebd_ref:    (D, NK)                 block-diagonal codebook, NK = num_blocks * K
    ecat_ref:   (NK, D)                 its transpose (for the one-hot gather)
    e2_ref:     (1, NK)                 ||E_k[j]||^2 per code
    codes_ref:  (BN_TILE, D)            quantized output (same layout as x)
    inds_ref:   (BN_TILE, num_blocks)   int32 per-block code indices
    commit_ref: (1, 1, num_blocks)      per-block partial sum of sq. error (this tile)
    """
    K = codebook_size
    d = block_dim
    NK = num_blocks * K

    x = x_ref[...].astype(jnp.float32)           # (BN_TILE, D)
    ebd = ebd_ref[...].astype(jnp.float32)       # (D, NK)
    ecat = ecat_ref[...].astype(jnp.float32)     # (NK, D)
    e2 = e2_ref[...]                             # (1, NK)

    # One fused MXU pass for all blocks: xe[t, k*K+j] = x_k[t] . E_k[j]
    xe = lax.dot_general(x, ebd, (((1,), (0,)), ((), ())),
                         preferred_element_type=jnp.float32)          # (BN_TILE, NK)
    # ||x_k||^2 is constant across a block's K columns -> irrelevant for argmin.
    dist = e2 - 2.0 * xe                                              # (BN_TILE, NK)

    col = lax.broadcasted_iota(jnp.int32, (bn_tile, NK), 1)
    blk_col = lax.broadcasted_iota(jnp.int32, (bn_tile, num_blocks), 1)

    onehot = jnp.zeros((bn_tile, NK), jnp.float32)
    inds = jnp.zeros((bn_tile, num_blocks), jnp.int32)
    for k in range(num_blocks):                  # static unroll (num_blocks small)
        lo = k * K
        in_blk = (col >= lo) & (col < lo + K)
        dist_k = jnp.where(in_blk, dist, jnp.inf)
        min_k = jnp.min(dist_k, axis=-1, keepdims=True)               # (BN_TILE, 1)
        # first-match tie break: min over matching global column indices
        cand = jnp.where(in_blk & (dist <= min_k), col, jnp.int32(NK))
        ind_g = jnp.min(cand, axis=-1, keepdims=True)                 # (BN_TILE, 1)
        onehot = onehot + (col == ind_g).astype(jnp.float32)
        inds = jnp.where(blk_col == k, ind_g - jnp.int32(lo), inds)

    # One-hot gather of selected codes, directly in the final (BN_TILE, D) layout.
    codes = lax.dot_general(onehot, ecat, (((1,), (0,)), ((), ())),
                            preferred_element_type=jnp.float32)       # (BN_TILE, D)

    codes_ref[...] = codes.astype(codes_ref.dtype)
    inds_ref[...] = inds

    # Per-block commitment partial sums over the VALID rows of this tile.
    row = lax.broadcasted_iota(jnp.int32, (bn_tile, 1), 0)
    valid = (row + pl.program_id(0) * bn_tile) < bn_valid
    diff = x - codes
    sq = jnp.where(valid, diff * diff, 0.0)
    colsum = jnp.sum(sq, axis=0, keepdims=True)                       # (1, D)
    dcol = lax.broadcasted_iota(jnp.int32, (1, num_blocks * d), 1)
    blk1 = lax.broadcasted_iota(jnp.int32, (1, num_blocks), 1)
    commit_row = jnp.zeros((1, num_blocks), jnp.float32)
    for k in range(num_blocks):
        in_d = (dcol >= k * d) & (dcol < (k + 1) * d)
        s_k = jnp.sum(jnp.where(in_d, colsum, 0.0), axis=-1, keepdims=True)  # (1, 1)
        commit_row = jnp.where(blk1 == k, s_k, commit_row)
    commit_ref[0] = commit_row


@functools.partial(jax.jit, static_argnames=("num_blocks", "bn_tile"))
def block_vector_quantize(x, codebooks, *, num_blocks, bn_tile=512):
    """x: (b, n, D) with D % num_blocks == 0; codebooks: (num_blocks, K, d)."""
    b, n, D = x.shape
    assert D % num_blocks == 0
    d = D // num_blocks
    K = codebooks.shape[1]
    BN = b * n
    NK = num_blocks * K

    # Block-diagonal codebook layouts (tiny; stay resident in VMEM).
    cb32 = codebooks.astype(jnp.float32)
    eye = jnp.eye(num_blocks, dtype=jnp.float32)
    e_cat = jnp.einsum("kjc,kl->kjlc", cb32, eye).reshape(NK, D)      # (NK, D)
    e_bd = e_cat.T                                                    # (D, NK)
    e2 = jnp.sum(cb32 * cb32, axis=-1).reshape(1, NK)                 # (1, NK)

    # Token tiling: BN_TILE rows per grid step (multiple of 8), pad BN if needed.
    tile = min(bn_tile, _round_up(BN, 8))
    tile = max(8, _round_up(tile, 8))
    bn_pad = _round_up(BN, tile)
    num_tiles = bn_pad // tile

    x_flat = x.reshape(BN, D)                    # bitcast, no HBM copy
    if bn_pad != BN:
        x_flat = jnp.pad(x_flat, ((0, bn_pad - BN), (0, 0)))

    kernel = functools.partial(
        _block_vq_kernel,
        num_blocks=num_blocks, codebook_size=K, block_dim=d,
        bn_tile=tile, bn_valid=BN)

    codes_p, inds_p, commit_p = pl.pallas_call(
        kernel,
        out_shape=(
            jax.ShapeDtypeStruct((bn_pad, D), x.dtype),
            jax.ShapeDtypeStruct((bn_pad, num_blocks), jnp.int32),
            jax.ShapeDtypeStruct((num_tiles, 1, num_blocks), jnp.float32),
        ),
        grid_spec=pltpu.PrefetchScalarGridSpec(
            num_scalar_prefetch=0,
            grid=(num_tiles,),
            in_specs=[
                pl.BlockSpec((tile, D), lambda t: (t, 0)),        # x tile (streamed)
                pl.BlockSpec((D, NK), lambda t: (0, 0)),          # block-diag codebook (resident)
                pl.BlockSpec((NK, D), lambda t: (0, 0)),          # its transpose (resident)
                pl.BlockSpec((1, NK), lambda t: (0, 0)),          # ||E||^2 (resident)
            ],
            out_specs=[
                pl.BlockSpec((tile, D), lambda t: (t, 0)),        # codes (lane-dense)
                pl.BlockSpec((tile, num_blocks), lambda t: (t, 0)),
                pl.BlockSpec((1, 1, num_blocks), lambda t: (t, 0, 0)),
            ],
        ),
        compiler_params=pltpu.CompilerParams(
            dimension_semantics=("parallel",)),
    )(x_flat, e_bd, e_cat, e2)

    codes = codes_p[:BN].reshape(b, n, D)
    inds = inds_p[:BN].reshape(b, n, num_blocks)
    commits = jnp.sum(commit_p, axis=(0, 1)) / jnp.float32(BN * d)
    # TODO(synk): `commits` is the unweighted per-block MSE (forward value only);
    # beta weighting / stop-gradient / EMA update of the original VectorQuantize
    # are training-time details not reproduced here.
    return codes, inds, commits


def _reference(x, codebooks, num_blocks):
    """Pure-JAX reference for correctness check."""
    b, n, D = x.shape
    d = D // num_blocks
    xb = x.reshape(b, n, num_blocks, d)
    codes, inds, commits = [], [], []
    for k in range(num_blocks):
        xk = xb[:, :, k, :]
        E = codebooks[k]
        dist = (jnp.sum(xk * xk, -1, keepdims=True)
                - 2.0 * jnp.einsum("bnd,kd->bnk", xk, E)
                + jnp.sum(E * E, -1)[None, None, :])
        ind = jnp.argmin(dist, axis=-1)
        code = E[ind]
        commit = jnp.mean((xk - code) ** 2)
        codes.append(code)
        inds.append(ind[..., None])
        commits.append(commit[None])
    return (jnp.concatenate(codes, -1),
            jnp.concatenate(inds, -1),
            jnp.concatenate(commits, -1))


def _check(x, codebooks, num_blocks, bn_tile):
    codes, inds, commits = block_vector_quantize(
        x, codebooks, num_blocks=num_blocks, bn_tile=bn_tile)
    jax.block_until_ready((codes, inds, commits))
    codes_r, inds_r, commits_r = _reference(x, codebooks, num_blocks)
    b, n, D = x.shape
    assert codes.shape == (b, n, D)
    assert inds.shape == (b, n, num_blocks)
    assert commits.shape == (num_blocks,)
    assert jnp.allclose(codes, codes_r, atol=1e-5), "codes mismatch"
    assert jnp.array_equal(inds, inds_r.astype(jnp.int32)), "inds mismatch"
    assert jnp.allclose(commits, commits_r, atol=1e-5, rtol=1e-5), "commits mismatch"


if __name__ == "__main__":
    num_blocks = 4
    d_per_block = 32
    codebook_size = 64
    D = num_blocks * d_per_block

    key = jax.random.PRNGKey(0)
    kx, kc, kx2 = jax.random.split(key, 3)
    codebooks = jax.random.normal(
        kc, (num_blocks, codebook_size, d_per_block), dtype=jnp.float32)

    # Small config: single token tile.
    x = jax.random.normal(kx, (2, 8, D), dtype=jnp.float32)
    _check(x, codebooks, num_blocks, bn_tile=512)

    # Multi-tile + padding path: BN=26 tokens, 8-row tiles -> 4 tiles, 6 padded rows.
    x2 = jax.random.normal(kx2, (2, 13, D), dtype=jnp.float32)
    _check(x2, codebooks, num_blocks, bn_tile=8)

    print("KERNEL_OK")
</pallas_src>

<mosaic_0001>
module attributes {stable_mosaic.version = 11 : i64} {
  func.func @_block_vq_kernel(%arg0: i32, %arg1: memref<16x128xf32, #tpu.memory_space<vmem>>, %arg2: memref<128x256xf32, #tpu.memory_space<vmem>>, %arg3: memref<256x128xf32, #tpu.memory_space<vmem>>, %arg4: memref<1x256xf32, #tpu.memory_space<vmem>>, %arg5: memref<16x128xf32, #tpu.memory_space<vmem>>, %arg6: memref<16x4xi32, #tpu.memory_space<vmem>>, %arg7: memref<1x1x4xf32, #tpu.memory_space<vmem>>) attributes {dimension_semantics = [#tpu.dimension_semantics<parallel>], iteration_bounds = array<i64: 1>, scalar_prefetch = 0 : i64, scratch_operands = 0 : i64, tpu.core_type = #tpu.core_type<tc>, window_params = [{transform_indices = @transform_0, window_bounds = array<i64: 16, 128>}, {pipeline_mode = #tpu.pipeline_mode<synchronous>, transform_indices = @transform_1, window_bounds = array<i64: 128, 256>}, {pipeline_mode = #tpu.pipeline_mode<synchronous>, transform_indices = @transform_2, window_bounds = array<i64: 256, 128>}, {pipeline_mode = #tpu.pipeline_mode<synchronous>, transform_indices = @transform_3, window_bounds = array<i64: 1, 256>}, {transform_indices = @transform_4, window_bounds = array<i64: 16, 128>}, {transform_indices = @transform_5, window_bounds = array<i64: 16, 4>}, {transform_indices = @transform_6, window_bounds = array<i64: 1, 1, 4>}]} {
    %c0 = arith.constant 0 : index
    %c0_0 = arith.constant 0 : index
    %0 = vector.load %arg1[%c0, %c0_0] : memref<16x128xf32, #tpu.memory_space<vmem>>, vector<16x128xf32>
    %c0_1 = arith.constant 0 : index
    %c0_2 = arith.constant 0 : index
    %1 = vector.load %arg2[%c0_1, %c0_2] : memref<128x256xf32, #tpu.memory_space<vmem>>, vector<128x256xf32>
    %c0_3 = arith.constant 0 : index
    %c0_4 = arith.constant 0 : index
    %2 = vector.load %arg3[%c0_3, %c0_4] : memref<256x128xf32, #tpu.memory_space<vmem>>, vector<256x128xf32>
    %c0_5 = arith.constant 0 : index
    %c0_6 = arith.constant 0 : index
    %3 = vector.load %arg4[%c0_5, %c0_6] : memref<1x256xf32, #tpu.memory_space<vmem>>, vector<1x256xf32>
    %cst = arith.constant dense<0.000000e+00> : vector<16x256xf32>
    %4 = tpu.matmul %0, %1, %cst {dimension_numbers = #tpu.dot_dimension_numbers<[1], [0], [0], [1], [0, 0, 1, 1], [], []>} : vector<16x128xf32>, vector<128x256xf32>, vector<16x256xf32> -> vector<16x256xf32>
    %cst_7 = arith.constant 2.000000e+00 : f32
    %5 = vector.broadcast %cst_7 : f32 to vector<16x256xf32>
    %6 = arith.mulf %5, %4 : vector<16x256xf32>
    %7 = vector.broadcast %3 : vector<1x256xf32> to vector<16x256xf32>
    %8 = arith.subf %7, %6 : vector<16x256xf32>
    %9 = tpu.iota {dimensions = array<i32: 1>} : vector<16x256xi32>
    %10 = tpu.iota {dimensions = array<i32: 1>} : vector<16x4xi32>
    %cst_8 = arith.constant 0.000000e+00 : f32
    %11 = vector.broadcast %cst_8 : f32 to vector<16x256xf32>
    %c0_i32 = arith.constant 0 : i32
    %12 = vector.broadcast %c0_i32 : i32 to vector<16x4xi32>
    %c0_i32_9 = arith.constant 0 : i32
    %13 = vector.broadcast %c0_i32_9 : i32 to vector<16x256xi32>
    %14 = arith.cmpi sge, %9, %13 : vector<16x256xi32>
    %c64_i32 = arith.constant 64 : i32
    %15 = vector.broadcast %c64_i32 : i32 to vector<16x256xi32>
    %16 = arith.cmpi slt, %9, %15 : vector<16x256xi32>
    %17 = arith.andi %14, %16 : vector<16x256xi1>
    %cst_10 = arith.constant 0x7F800000 : f32
    %18 = vector.broadcast %cst_10 : f32 to vector<16x256xf32>
    %19 = arith.select %17, %8, %18 : vector<16x256xi1>, vector<16x256xf32>
    %cst_11 = arith.constant dense<0x7F800000> : vector<16xf32>
    %20 = vector.multi_reduction <minimumf>, %19, %cst_11 [1] : vector<16x256xf32> to vector<16xf32>
    %21 = vector.shape_cast %20 : vector<16xf32> to vector<16x1xf32>
    %22 = vector.broadcast %21 : vector<16x1xf32> to vector<16x256xf32>
    %23 = arith.cmpf ole, %8, %22 : vector<16x256xf32>
    %24 = arith.andi %17, %23 : vector<16x256xi1>
    %c256_i32 = arith.constant 256 : i32
    %25 = vector.broadcast %c256_i32 : i32 to vector<16x256xi32>
    %26 = arith.select %24, %9, %25 : vector<16x256xi1>, vector<16x256xi32>
    %cst_12 = arith.constant dense<2147483647> : vector<16xi32>
    %27 = vector.multi_reduction <minsi>, %26, %cst_12 [1] : vector<16x256xi32> to vector<16xi32>
    %28 = vector.shape_cast %27 : vector<16xi32> to vector<16x1xi32>
    %29 = vector.broadcast %28 : vector<16x1xi32> to vector<16x256xi32>
    %30 = arith.cmpi eq, %9, %29 : vector<16x256xi32>
    %31 = arith.extui %30 : vector<16x256xi1> to vector<16x256xi32>
    %32 = arith.sitofp %31 : vector<16x256xi32> to vector<16x256xf32>
    %33 = arith.addf %11, %32 : vector<16x256xf32>
    %c0_i32_13 = arith.constant 0 : i32
    %34 = vector.broadcast %c0_i32_13 : i32 to vector<16x4xi32>
    %35 = arith.cmpi eq, %10, %34 : vector<16x4xi32>
    %c0_i32_14 = arith.constant 0 : i32
    %36 = vector.broadcast %c0_i32_14 : i32 to vector<16x1xi32>
    %37 = arith.subi %28, %36 : vector<16x1xi32>
    %38 = vector.shape_cast %37 : vector<16x1xi32> to vector<16x1xi32>
    %39 = vector.broadcast %38 : vector<16x1xi32> to vector<16x4xi32>
    %40 = arith.select %35, %39, %12 : vector<16x4xi1>, vector<16x4xi32>
    %c64_i32_15 = arith.constant 64 : i32
    %41 = vector.broadcast %c64_i32_15 : i32 to vector<16x256xi32>
    %42 = arith.cmpi sge, %9, %41 : vector<16x256xi32>
    %c128_i32 = arith.constant 128 : i32
    %43 = vector.broadcast %c128_i32 : i32 to vector<16x256xi32>
    %44 = arith.cmpi slt, %9, %43 : vector<16x256xi32>
    %45 = arith.andi %42, %44 : vector<16x256xi1>
    %cst_16 = arith.constant 0x7F800000 : f32
    %46 = vector.broadcast %cst_16 : f32 to vector<16x256xf32>
    %47 = arith.select %45, %8, %46 : vector<16x256xi1>, vector<16x256xf32>
    %cst_17 = arith.constant dense<0x7F800000> : vector<16xf32>
    %48 = vector.multi_reduction <minimumf>, %47, %cst_17 [1] : vector<16x256xf32> to vector<16xf32>
    %49 = vector.shape_cast %48 : vector<16xf32> to vector<16x1xf32>
    %50 = vector.broadcast %49 : vector<16x1xf32> to vector<16x256xf32>
    %51 = arith.cmpf ole, %8, %50 : vector<16x256xf32>
    %52 = arith.andi %45, %51 : vector<16x256xi1>
    %c256_i32_18 = arith.constant 256 : i32
    %53 = vector.broadcast %c256_i32_18 : i32 to vector<16x256xi32>
    %54 = arith.select %52, %9, %53 : vector<16x256xi1>, vector<16x256xi32>
    %cst_19 = arith.constant dense<2147483647> : vector<16xi32>
    %55 = vector.multi_reduction <minsi>, %54, %cst_19 [1] : vector<16x256xi32> to vector<16xi32>
    %56 = vector.shape_cast %55 : vector<16xi32> to vector<16x1xi32>
    %57 = vector.broadcast %56 : vector<16x1xi32> to vector<16x256xi32>
    %58 = arith.cmpi eq, %9, %57 : vector<16x256xi32>
    %59 = arith.extui %58 : vector<16x256xi1> to vector<16x256xi32>
    %60 = arith.sitofp %59 : vector<16x256xi32> to vector<16x256xf32>
    %61 = arith.addf %33, %60 : vector<16x256xf32>
    %c1_i32 = arith.constant 1 : i32
    %62 = vector.broadcast %c1_i32 : i32 to vector<16x4xi32>
    %63 = arith.cmpi eq, %10, %62 : vector<16x4xi32>
    %c64_i32_20 = arith.constant 64 : i32
    %64 = vector.broadcast %c64_i32_20 : i32 to vector<16x1xi32>
    %65 = arith.subi %56, %64 : vector<16x1xi32>
    %66 = vector.shape_cast %65 : vector<16x1xi32> to vector<16x1xi32>
    %67 = vector.broadcast %66 : vector<16x1xi32> to vector<16x4xi32>
    %68 = arith.select %63, %67, %40 : vector<16x4xi1>, vector<16x4xi32>
    %c128_i32_21 = arith.constant 128 : i32
    %69 = vector.broadcast %c128_i32_21 : i32 to vector<16x256xi32>
    %70 = arith.cmpi sge, %9, %69 : vector<16x256xi32>
    %c192_i32 = arith.constant 192 : i32
    %71 = vector.broadcast %c192_i32 : i32 to vector<16x256xi32>
    %72 = arith.cmpi slt, %9, %71 : vector<16x256xi32>
    %73 = arith.andi %70, %72 : vector<16x256xi1>
    %cst_22 = arith.constant 0x7F800000 : f32
    %74 = vector.broadcast %cst_22 : f32 to vector<16x256xf32>
    %75 = arith.select %73, %8, %74 : vector<16x256xi1>, vector<16x256xf32>
    %cst_23 = arith.constant dense<0x7F800000> : vector<16xf32>
    %76 = vector.multi_reduction <minimumf>, %75, %cst_23 [1] : vector<16x256xf32> to vector<16xf32>
    %77 = vector.shape_cast %76 : vector<16xf32> to vector<16x1xf32>
    %78 = vector.broadcast %77 : vector<16x1xf32> to vector<16x256xf32>
    %79 = arith.cmpf ole, %8, %78 : vector<16x256xf32>
    %80 = arith.andi %73, %79 : vector<16x256xi1>
    %c256_i32_24 = arith.constant 256 : i32
    %81 = vector.broadcast %c256_i32_24 : i32 to vector<16x256xi32>
    %82 = arith.select %80, %9, %81 : vector<16x256xi1>, vector<16x256xi32>
    %cst_25 = arith.constant dense<2147483647> : vector<16xi32>
    %83 = vector.multi_reduction <minsi>, %82, %cst_25 [1] : vector<16x256xi32> to vector<16xi32>
    %84 = vector.shape_cast %83 : vector<16xi32> to vector<16x1xi32>
    %85 = vector.broadcast %84 : vector<16x1xi32> to vector<16x256xi32>
    %86 = arith.cmpi eq, %9, %85 : vector<16x256xi32>
    %87 = arith.extui %86 : vector<16x256xi1> to vector<16x256xi32>
    %88 = arith.sitofp %87 : vector<16x256xi32> to vector<16x256xf32>
    %89 = arith.addf %61, %88 : vector<16x256xf32>
    %c2_i32 = arith.constant 2 : i32
    %90 = vector.broadcast %c2_i32 : i32 to vector<16x4xi32>
    %91 = arith.cmpi eq, %10, %90 : vector<16x4xi32>
    %c128_i32_26 = arith.constant 128 : i32
    %92 = vector.broadcast %c128_i32_26 : i32 to vector<16x1xi32>
    %93 = arith.subi %84, %92 : vector<16x1xi32>
    %94 = vector.shape_cast %93 : vector<16x1xi32> to vector<16x1xi32>
    %95 = vector.broadcast %94 : vector<16x1xi32> to vector<16x4xi32>
    %96 = arith.select %91, %95, %68 : vector<16x4xi1>, vector<16x4xi32>
    %c192_i32_27 = arith.constant 192 : i32
    %97 = vector.broadcast %c192_i32_27 : i32 to vector<16x256xi32>
    %98 = arith.cmpi sge, %9, %97 : vector<16x256xi32>
    %c256_i32_28 = arith.constant 256 : i32
    %99 = vector.broadcast %c256_i32_28 : i32 to vector<16x256xi32>
    %100 = arith.cmpi slt, %9, %99 : vector<16x256xi32>
    %101 = arith.andi %98, %100 : vector<16x256xi1>
    %cst_29 = arith.constant 0x7F800000 : f32
    %102 = vector.broadcast %cst_29 : f32 to vector<16x256xf32>
    %103 = arith.select %101, %8, %102 : vector<16x256xi1>, vector<16x256xf32>
    %cst_30 = arith.constant dense<0x7F800000> : vector<16xf32>
    %104 = vector.multi_reduction <minimumf>, %103, %cst_30 [1] : vector<16x256xf32> to vector<16xf32>
    %105 = vector.shape_cast %104 : vector<16xf32> to vector<16x1xf32>
    %106 = vector.broadcast %105 : vector<16x1xf32> to vector<16x256xf32>
    %107 = arith.cmpf ole, %8, %106 : vector<16x256xf32>
    %108 = arith.andi %101, %107 : vector<16x256xi1>
    %c256_i32_31 = arith.constant 256 : i32
    %109 = vector.broadcast %c256_i32_31 : i32 to vector<16x256xi32>
    %110 = arith.select %108, %9, %109 : vector<16x256xi1>, vector<16x256xi32>
    %cst_32 = arith.constant dense<2147483647> : vector<16xi32>
    %111 = vector.multi_reduction <minsi>, %110, %cst_32 [1] : vector<16x256xi32> to vector<16xi32>
    %112 = vector.shape_cast %111 : vector<16xi32> to vector<16x1xi32>
    %113 = vector.broadcast %112 : vector<16x1xi32> to vector<16x256xi32>
    %114 = arith.cmpi eq, %9, %113 : vector<16x256xi32>
    %115 = arith.extui %114 : vector<16x256xi1> to vector<16x256xi32>
    %116 = arith.sitofp %115 : vector<16x256xi32> to vector<16x256xf32>
    %117 = arith.addf %89, %116 : vector<16x256xf32>
    %c3_i32 = arith.constant 3 : i32
    %118 = vector.broadcast %c3_i32 : i32 to vector<16x4xi32>
    %119 = arith.cmpi eq, %10, %118 : vector<16x4xi32>
    %c192_i32_33 = arith.constant 192 : i32
    %120 = vector.broadcast %c192_i32_33 : i32 to vector<16x1xi32>
    %121 = arith.subi %112, %120 : vector<16x1xi32>
    %122 = vector.shape_cast %121 : vector<16x1xi32> to vector<16x1xi32>
    %123 = vector.broadcast %122 : vector<16x1xi32> to vector<16x4xi32>
    %124 = arith.select %119, %123, %96 : vector<16x4xi1>, vector<16x4xi32>
    %cst_34 = arith.constant dense<0.000000e+00> : vector<16x128xf32>
    %125 = tpu.matmul %117, %2, %cst_34 {dimension_numbers = #tpu.dot_dimension_numbers<[1], [0], [0], [1], [0, 0, 1, 1], [], []>} : vector<16x256xf32>, vector<256x128xf32>, vector<16x128xf32> -> vector<16x128xf32>
    %c0_35 = arith.constant 0 : index
    %c0_36 = arith.constant 0 : index
    %126 = vector.load %arg5[%c0_35, %c0_36] : memref<16x128xf32, #tpu.memory_space<vmem>>, vector<16x128xf32>
    tpu.vector_store %arg5[%c0_35, %c0_36], %125 {strides = array<i32>} : memref<16x128xf32, #tpu.memory_space<vmem>>, vector<16x128xf32>,
    %c0_37 = arith.constant 0 : index
    %c0_38 = arith.constant 0 : index
    %127 = vector.load %arg6[%c0_37, %c0_38] : memref<16x4xi32, #tpu.memory_space<vmem>>, vector<16x4xi32>
    tpu.vector_store %arg6[%c0_37, %c0_38], %124 {strides = array<i32>} : memref<16x4xi32, #tpu.memory_space<vmem>>, vector<16x4xi32>,
    %128 = tpu.iota {dimensions = array<i32: 0>} : vector<16x1xi32>
    %c16_i32 = arith.constant 16 : i32
    %129 = arith.muli %arg0, %c16_i32 : i32
    %130 = vector.broadcast %129 : i32 to vector<16x1xi32>
    %131 = arith.addi %128, %130 : vector<16x1xi32>
    %c16_i32_39 = arith.constant 16 : i32
    %132 = vector.broadcast %c16_i32_39 : i32 to vector<16x1xi32>
    %133 = arith.cmpi slt, %131, %132 : vector<16x1xi32>
    %134 = arith.subf %0, %125 : vector<16x128xf32>
    %135 = arith.mulf %134, %134 : vector<16x128xf32>
    %cst_40 = arith.constant 0.000000e+00 : f32
    %136 = vector.shape_cast %133 : vector<16x1xi1> to vector<16x1xi1>
    %137 = vector.broadcast %136 : vector<16x1xi1> to vector<16x128xi1>
    %138 = vector.broadcast %cst_40 : f32 to vector<16x128xf32>
    %139 = arith.select %137, %135, %138 : vector<16x128xi1>, vector<16x128xf32>
    %cst_41 = arith.constant dense<0.000000e+00> : vector<128xf32>
    %140 = vector.multi_reduction <add>, %139, %cst_41 [0] : vector<16x128xf32> to vector<128xf32>
    %141 = vector.shape_cast %140 : vector<128xf32> to vector<1x128xf32>
    %142 = tpu.iota {dimensions = array<i32: 1>} : vector<1x128xi32>
    %143 = tpu.iota {dimensions = array<i32: 1>} : vector<1x4xi32>
    %cst_42 = arith.constant 0.000000e+00 : f32
    %144 = vector.broadcast %cst_42 : f32 to vector<1x4xf32>
    %c0_i32_43 = arith.constant 0 : i32
    %145 = vector.broadcast %c0_i32_43 : i32 to vector<1x128xi32>
    %146 = arith.cmpi sge, %142, %145 : vector<1x128xi32>
    %c32_i32 = arith.constant 32 : i32
    %147 = vector.broadcast %c32_i32 : i32 to vector<1x128xi32>
    %148 = arith.cmpi slt, %142, %147 : vector<1x128xi32>
    %149 = arith.andi %146, %148 : vector<1x128xi1>
    %cst_44 = arith.constant 0.000000e+00 : f32
    %150 = vector.broadcast %cst_44 : f32 to vector<1x128xf32>
    %151 = arith.select %149, %141, %150 : vector<1x128xi1>, vector<1x128xf32>
    %cst_45 = arith.constant dense<0.000000e+00> : vector<1xf32>
    %152 = vector.multi_reduction <add>, %151, %cst_45 [1] : vector<1x128xf32> to vector<1xf32>
    %153 = vector.shape_cast %152 : vector<1xf32> to vector<1x1xf32>
    %c0_i32_46 = arith.constant 0 : i32
    %154 = vector.broadcast %c0_i32_46 : i32 to vector<1x4xi32>
    %155 = arith.cmpi eq, %143, %154 : vector<1x4xi32>
    %156 = vector.shape_cast %153 : vector<1x1xf32> to vector<1x1xf32>
    %157 = vector.broadcast %156 : vector<1x1xf32> to vector<1x4xf32>
    %158 = arith.select %155, %157, %144 : vector<1x4xi1>, vector<1x4xf32>
    %c32_i32_47 = arith.constant 32 : i32
    %159 = vector.broadcast %c32_i32_47 : i32 to vector<1x128xi32>
    %160 = arith.cmpi sge, %142, %159 : vector<1x128xi32>
    %c64_i32_48 = arith.constant 64 : i32
    %161 = vector.broadcast %c64_i32_48 : i32 to vector<1x128xi32>
    %162 = arith.cmpi slt, %142, %161 : vector<1x128xi32>
    %163 = arith.andi %160, %162 : vector<1x128xi1>
    %cst_49 = arith.constant 0.000000e+00 : f32
    %164 = vector.broadcast %cst_49 : f32 to vector<1x128xf32>
    %165 = arith.select %163, %141, %164 : vector<1x128xi1>, vector<1x128xf32>
    %cst_50 = arith.constant dense<0.000000e+00> : vector<1xf32>
    %166 = vector.multi_reduction <add>, %165, %cst_50 [1] : vector<1x128xf32> to vector<1xf32>
    %167 = vector.shape_cast %166 : vector<1xf32> to vector<1x1xf32>
    %c1_i32_51 = arith.constant 1 : i32
    %168 = vector.broadcast %c1_i32_51 : i32 to vector<1x4xi32>
    %169 = arith.cmpi eq, %143, %168 : vector<1x4xi32>
    %170 = vector.shape_cast %167 : vector<1x1xf32> to vector<1x1xf32>
    %171 = vector.broadcast %170 : vector<1x1xf32> to vector<1x4xf32>
    %172 = arith.select %169, %171, %158 : vector<1x4xi1>, vector<1x4xf32>
    %c64_i32_52 = arith.constant 64 : i32
    %173 = vector.broadcast %c64_i32_52 : i32 to vector<1x128xi32>
    %174 = arith.cmpi sge, %142, %173 : vector<1x128xi32>
    %c96_i32 = arith.constant 96 : i32
    %175 = vector.broadcast %c96_i32 : i32 to vector<1x128xi32>
    %176 = arith.cmpi slt, %142, %175 : vector<1x128xi32>
    %177 = arith.andi %174, %176 : vector<1x128xi1>
    %cst_53 = arith.constant 0.000000e+00 : f32
    %178 = vector.broadcast %cst_53 : f32 to vector<1x128xf32>
    %179 = arith.select %177, %141, %178 : vector<1x128xi1>, vector<1x128xf32>
    %cst_54 = arith.constant dense<0.000000e+00> : vector<1xf32>
    %180 = vector.multi_reduction <add>, %179, %cst_54 [1] : vector<1x128xf32> to vector<1xf32>
    %181 = vector.shape_cast %180 : vector<1xf32> to vector<1x1xf32>
    %c2_i32_55 = arith.constant 2 : i32
    %182 = vector.broadcast %c2_i32_55 : i32 to vector<1x4xi32>
    %183 = arith.cmpi eq, %143, %182 : vector<1x4xi32>
    %184 = vector.shape_cast %181 : vector<1x1xf32> to vector<1x1xf32>
    %185 = vector.broadcast %184 : vector<1x1xf32> to vector<1x4xf32>
    %186 = arith.select %183, %185, %172 : vector<1x4xi1>, vector<1x4xf32>
    %c96_i32_56 = arith.constant 96 : i32
    %187 = vector.broadcast %c96_i32_56 : i32 to vector<1x128xi32>
    %188 = arith.cmpi sge, %142, %187 : vector<1x128xi32>
    %c128_i32_57 = arith.constant 128 : i32
    %189 = vector.broadcast %c128_i32_57 : i32 to vector<1x128xi32>
    %190 = arith.cmpi slt, %142, %189 : vector<1x128xi32>
    %191 = arith.andi %188, %190 : vector<1x128xi1>
    %cst_58 = arith.constant 0.000000e+00 : f32
    %192 = vector.broadcast %cst_58 : f32 to vector<1x128xf32>
    %193 = arith.select %191, %141, %192 : vector<1x128xi1>, vector<1x128xf32>
    %cst_59 = arith.constant dense<0.000000e+00> : vector<1xf32>
    %194 = vector.multi_reduction <add>, %193, %cst_59 [1] : vector<1x128xf32> to vector<1xf32>
    %195 = vector.shape_cast %194 : vector<1xf32> to vector<1x1xf32>
    %c3_i32_60 = arith.constant 3 : i32
    %196 = vector.broadcast %c3_i32_60 : i32 to vector<1x4xi32>
    %197 = arith.cmpi eq, %143, %196 : vector<1x4xi32>
    %198 = vector.shape_cast %195 : vector<1x1xf32> to vector<1x1xf32>
    %199 = vector.broadcast %198 : vector<1x1xf32> to vector<1x4xf32>
    %200 = arith.select %197, %199, %186 : vector<1x4xi1>, vector<1x4xf32>
    %c0_61 = arith.constant 0 : index
    %c0_62 = arith.constant 0 : index
    %c0_63 = arith.constant 0 : index
    %201 = vector.load %arg7[%c0_61, %c0_62, %c0_63] : memref<1x1x4xf32, #tpu.memory_space<vmem>>, vector<1x1x4xf32>
    %202 = vector.shape_cast %201 : vector<1x1x4xf32> to vector<1x4xf32>
    %203 = vector.shape_cast %200 : vector<1x4xf32> to vector<1x1x4xf32>
    tpu.vector_store %arg7[%c0_61, %c0_62, %c0_63], %203 {strides = array<i32>} : memref<1x1x4xf32, #tpu.memory_space<vmem>>, vector<1x1x4xf32>,
    return
  }
  func.func @transform_0(%arg0: i32) -> (i32, i32) {
    %c0_i32 = arith.constant 0 : i32
    %c0_i32_0 = arith.constant 0 : i32
    return %arg0, %c0_i32 : i32, i32
  }
  func.func @transform_1(%arg0: i32) -> (i32, i32) {
    %c0_i32 = arith.constant 0 : i32
    %c0_i32_0 = arith.constant 0 : i32
    %c0_i32_1 = arith.constant 0 : i32
    return %c0_i32, %c0_i32_0 : i32, i32
  }
  func.func @transform_2(%arg0: i32) -> (i32, i32) {
    %c0_i32 = arith.constant 0 : i32
    %c0_i32_0 = arith.constant 0 : i32
    %c0_i32_1 = arith.constant 0 : i32
    return %c0_i32, %c0_i32_0 : i32, i32
  }
  func.func @transform_3(%arg0: i32) -> (i32, i32) {
    %c0_i32 = arith.constant 0 : i32
    %c0_i32_0 = arith.constant 0 : i32
    %c0_i32_1 = arith.constant 0 : i32
    return %c0_i32, %c0_i32_0 : i32, i32
  }
  func.func @transform_4(%arg0: i32) -> (i32, i32) {
    %c0_i32 = arith.constant 0 : i32
    %c0_i32_0 = arith.constant 0 : i32
    return %arg0, %c0_i32 : i32, i32
  }
  func.func @transform_5(%arg0: i32) -> (i32, i32) {
    %c0_i32 = arith.constant 0 : i32
    %c0_i32_0 = arith.constant 0 : i32
    return %arg0, %c0_i32 : i32, i32
  }
  func.func @transform_6(%arg0: i32) -> (i32, i32, i32) {
    %c0_i32 = arith.constant 0 : i32
    %c0_i32_0 = arith.constant 0 : i32
    %c0_i32_1 = arith.constant 0 : i32
    return %arg0, %c0_i32, %c0_i32_0 : i32, i32, i32
  }
}

</mosaic_0001>

<bundles_post_ra>
// kernel: block_vector_quantize.1
= control target key start
LH: loop header
LB: loop body
LE: loop exit
PB: predicated region body
PF: predicated region fallthrough
CT: control target
= control target key end

     0   :  { %v821_v7 = vmov 0.0   ;;  %s1303_s0 = inlined_call_operand.vmem [shape: f32[16,128], index: 0, kind: input, shape index: {}]   ;;  %s1304_s1 = inlined_call_operand.vmem [shape: f32[128,256], index: 1, kind: input, shape index: {}]   ;;  %s1305_s2 = inlined_call_operand.vmem [shape: f32[256,128], index: 2, kind: input, shape index: {}]   ;;  %s1306_s3 = inlined_call_operand.vmem [shape: f32[1,256], index: 3, kind: input, shape index: {}]   ;;  %s1307_s4 = inlined_call_operand.hbm [shape: f32[16,128], index: 4, kind: output, shape index: {0}]   ;;  %s1308_s5 = inlined_call_operand.vmem [shape: s32[16,4], index: 5, kind: output, shape index: {1}]   ;;  %s1309_s6 = inlined_call_operand.vmem [shape: f32[1,1,4], index: 6, kind: output, shape index: {2}]  }
   0x1   :  { %v24_v0 = vld [vmem:[%s1304_s1 + $0x8] sm:$0xff]  ;;  %v26_v1 = vld [vmem:[%s1304_s1 + $0x18] sm:$0xff]  ;;  %v23_v2 = vld [vmem:[%s1304_s1] sm:$0xff]  ;;  %152 = vmatprep.mubr.f32.mxu0 %v821_v7 }
   0x2   :  { %v729_v3 = vpack.c.bf16 %v26_v1, %v24_v0  ;;  %v25_v4 = vld [vmem:[%s1304_s1 + $0x10] sm:$0xff]  ;;  %v28_v5 = vld [vmem:[%s1304_s1 + $0x28] sm:$0xff]  ;;  %v30_v6 = vld [vmem:[%s1304_s1 + $0x38] sm:$0xff] }
   0x3   :  { %v731_v8 = vpack.c.bf16 %v25_v4, %v23_v2  ;;  %v733_v9 = vpack.c.bf16 %v30_v6, %v28_v5  ;;  %v27_v10 = vld [vmem:[%s1304_s1 + $0x20] sm:$0xff]  ;;  %v29_v11 = vld [vmem:[%s1304_s1 + $0x30] sm:$0xff]  ;;  %v32_v12 = vld [vmem:[%s1304_s1 + $0x48] sm:$0xff] }
   0x4   :  { %730 = vmatprep.subr.bf16.mxu0 %v729_v3  ;;  %v34_v13 = vld [vmem:[%s1304_s1 + $0x58] sm:$0xff]  ;;  %v735_v14 = vpack.c.bf16 %v29_v11, %v27_v10  ;;  %v31_v16 = vld [vmem:[%s1304_s1 + $0x40] sm:$0xff]  ;;  %v33_v17 = vld [vmem:[%s1304_s1 + $0x50] sm:$0xff] }
   0x5   :  { %732 = vmatpush1.bf16.msra.mxu0 %v731_v8  ;;  %v737_v15 = vpack.c.bf16 %v34_v13, %v32_v12  ;;  %v36_v18 = vld [vmem:[%s1304_s1 + $0x68] sm:$0xff]  ;;  %v38_v19 = vld [vmem:[%s1304_s1 + $0x78] sm:$0xff]  ;;  %v739_v20 = vpack.c.bf16 %v33_v17, %v31_v16  ;;  %v35_v22 = vld [vmem:[%s1304_s1 + $0x60] sm:$0xff] }
   0x6   :  { %734 = vmatprep.subr.bf16.mxu0 %v733_v9  ;;  %v741_v21 = vpack.c.bf16 %v38_v19, %v36_v18  ;;  %v37_v23 = vld [vmem:[%s1304_s1 + $0x70] sm:$0xff]  ;;  %v40_v24 = vld [vmem:[%s1304_s1 + $0x88] sm:$0xff]  ;;  %v42_v25 = vld [vmem:[%s1304_s1 + $0x98] sm:$0xff] }
   0x9   :  { %736 = vmatpush1.bf16.msra.mxu0 %v735_v14 }
   0xa   :  { %738 = vmatprep.subr.bf16.mxu0 %v737_v15 }
   0xb   :  { %12 = vsyncpa [#allocation3], 0  ;;  %v743_v26 = vpack.c.bf16 %v37_v23, %v35_v22  ;;  %v745_v27 = vpack.c.bf16 %v42_v25, %v40_v24  ;;  %v39_v28 = vld [vmem:[%s1304_s1 + $0x80] sm:$0xff]  ;;  %v41_v29 = vld [vmem:[%s1304_s1 + $0x90] sm:$0xff]  ;;  %v170_v51 = vlaneseq }
   0xc   :  { %v44_v30 = vld [vmem:[%s1304_s1 + $0xa8] sm:$0xff]  ;;  %v46_v31 = vld [vmem:[%s1304_s1 + $0xb8] sm:$0xff]  ;;  %v747_v32 = vpack.c.bf16 %v41_v29, %v39_v28  ;;  %v43_v34 = vld [vmem:[%s1304_s1 + $0xa0] sm:$0xff] }
   0xd   :  { %740 = vmatpush1.bf16.msra.mxu0 %v739_v20  ;;  %v749_v33 = vpack.c.bf16 %v46_v31, %v44_v30  ;;  %v45_v35 = vld [vmem:[%s1304_s1 + $0xb0] sm:$0xff]  ;;  %v48_v36 = vld [vmem:[%s1304_s1 + $0xc8] sm:$0xff]  ;;  %v50_v37 = vld [vmem:[%s1304_s1 + $0xd8] sm:$0xff]  ;;  %v171_v52 = vshrl.u32 %v170_v51, 7  ;;  %v970_v54 = vand.u32 127, %v170_v51 }
   0xe   :  { %742 = vmatprep.subr.bf16.mxu0 %v741_v21  ;;  %v751_v38 = vpack.c.bf16 %v45_v35, %v43_v34  ;;  %v753_v39 = vpack.c.bf16 %v50_v37, %v48_v36  ;;  %v47_v40 = vld [vmem:[%s1304_s1 + $0xc0] sm:$0xff]  ;;  %v49_v41 = vld [vmem:[%s1304_s1 + $0xd0] sm:$0xff]  ;;  %v52_v42 = vld [vmem:[%s1304_s1 + $0xe8] sm:$0xff] }
   0xf   :  { %v54_v43 = vld [vmem:[%s1304_s1 + $0xf8] sm:$0xff]  ;;  %v755_v44 = vpack.c.bf16 %v49_v41, %v47_v40  ;;  %v51_v46 = vld [vmem:[%s1304_s1 + $0xe0] sm:$0xff]  ;;  %v53_v47 = vld [vmem:[%s1304_s1 + $0xf0] sm:$0xff]  ;;  %v172_v53 = vsub.s32 0, %v171_v52  ;;  %v176_v56 = vsub.s32 1, %v171_v52  ;;  %v976_v58 = vadd.s32 128, %v970_v54 }
  0x10   :  { %v757_v45 = vpack.c.bf16 %v54_v43, %v52_v42  ;;  %v759_v48 = vpack.c.bf16 %v53_v47, %v51_v46  ;;  %v960_v49 = vld [vmem:[%s1303_s0] sm:$0xff]  ;;  %v967_v50 = vld [vmem:[%s1303_s0 + $0x8] sm:$0xff]  ;;  %vm189_vm0 = vcmp.lt.s32.totalorder %v970_v54, 64  ;;  %vm266_vm2 = vcmp.ge.s32.totalorder %v970_v54, 64 }
  0x11   :  { %744 = vmatpush1.bf16.msra.mxu0 %v743_v26  ;;  %v87_v55 = vld [vmem:[%s1306_s3] sm:$0x3]  ;;  %vm350_vm1 = vcmp.lt.s32.totalorder %v976_v58, 192  ;;  %vm429_vm3 = vcmp.ge.s32.totalorder %v976_v58, 192 }
  0x12   :  { %746 = vmatprep.subr.bf16.mxu0 %v745_v27  ;;  %v173_v57 = vrot.slane %v87_v55, %v172_v53  ;;  %v177_v60 = vrot.slane %v87_v55, %v176_v56 }
  0x15   :  { %748 = vmatpush1.bf16.msra.mxu0 %v747_v32 }
  0x16   :  { %750 = vmatprep.subr.bf16.mxu0 %v749_v33 }
  0x19   :  { %752 = vmatpush1.bf16.msra.mxu0 %v751_v38 }
  0x1a   :  { %754 = vmatprep.subr.bf16.mxu0 %v753_v39 }
  0x1d   :  { %756 = vmatpush1.bf16.msra.mxu0 %v755_v44 }
  0x1e   :  { %758 = vmatprep.subr.bf16.mxu0 %v757_v45 }
  0x21   :  { %760 = vmatpush1.bf16.msra.mxu0 %v759_v48 }
  0x24   :  { %153 = vmatmul.mubr.f32.vlgmr.msra.gmra.mrb[0].mxu0 %v960_v49 }
  0x25   :  { %158 = vmatprep.mubr.f32.mxu0 %v821_v7 }
  0x28   :  { %159 = vmatmul.mubr.f32.gmra.mrb[2].mxu0 %v967_v50 }
  0xf7   :  { %v154_v59 = vpop.f32.mrb[0].mxu0 }
  0xf8   :  { %v165_v61 = vmul.f32 2.0, %v154_v59  ;;  %v156_v62 = vpop.f32.mrb[1].mxu0 }
  0xf9   :  { %v166_v63 = vmul.f32 2.0, %v156_v62  ;;  %v72_v62 = vld [vmem:[%s1305_s2 + $0x88] sm:$0xff] }
  0xfa   :  { %v180_v0 = vsub.f32 %v173_v57, %v165_v61  ;;  %v71_v61 = vld [vmem:[%s1305_s2 + $0x80] sm:$0xff] }
  0xfb   :  { %v181_v1 = vsub.f32 %v177_v60, %v166_v63  ;;  %v160_v2 = vpop.f32.mrb[2].mxu0  ;;  %v55_v63 = vld [vmem:[%s1305_s2] sm:$0xff] }
  0xfc   :  { %v193_v3 = vsel %vm189_vm0, %v180_v0, inf  ;;  %v167_v4 = vmul.f32 2.0, %v160_v2  ;;  %v162_v5 = vpop.f32.mrb[3].mxu0  ;;  %v272_v9 = vsel %vm266_vm2, %v180_v0, inf  ;;  %v73_v2 = vld [vmem:[%s1305_s2 + $0x90] sm:$0xff] }
  0xfd   :  { %198 = vmin.xlane.f32.xlu0 %v193_v3  ;;  %v354_v6 = vsel %vm350_vm1, %v181_v1, inf  ;;  %v168_v10 = vmul.f32 2.0, %v162_v5  ;;  %v435_v11 = vsel %vm429_vm3, %v181_v1, inf  ;;  %v74_v3 = vld [vmem:[%s1305_s2 + $0x98] sm:$0xff] }
  0xfe   :  { %358 = vmin.xlane.f32.xlu1 %v354_v6  ;;  %v182_v8 = vsub.f32 %v173_v57, %v167_v4  ;;  %v765_v5 = vpack.c.bf16 %v74_v3, %v73_v2  ;;  %v57_v6 = vld [vmem:[%s1305_s2 + $0x10] sm:$0xff] }
  0xff   :  { %v183_v14 = vsub.f32 %v177_v60, %v168_v10  ;;  %v76_v10 = vld [vmem:[%s1305_s2 + $0xa8] sm:$0xff]  ;;  %v65_v3 = vld [vmem:[%s1305_s2 + $0x50] sm:$0xff] }
 0x100   :  { %v274_v12 = vsel %vm266_vm2, %v182_v8, inf  ;;  %v195_v13 = vsel %vm189_vm0, %v182_v8, inf }
 0x101   :  { %277 = vmin.xlane.f32.xlu0 %v272_v9  ;;  %v356_v15 = vsel %vm350_vm1, %v183_v14, inf  ;;  %v437_v16 = vsel %vm429_vm3, %v183_v14, inf  ;;  %v75_v9 = vld [vmem:[%s1305_s2 + $0xa0] sm:$0xff] }
 0x102   :  { %439 = vmin.xlane.f32.xlu1 %v435_v11 }
 0x105   :  { %280 = vmin.xlane.f32.xlu0 %v274_v12  ;;  %v769_v12 = vpack.c.bf16 %v76_v10, %v75_v9  ;;  %v67_v10 = vld [vmem:[%s1305_s2 + $0x60] sm:$0xff] }
 0x106   :  { %201 = vmin.xlane.f32.xlu1 %v195_v13  ;;  %v59_v13 = vld [vmem:[%s1305_s2 + $0x20] sm:$0xff] }
 0x109   :  { %361 = vmin.xlane.f32.xlu0 %v356_v15  ;;  %v77_v15 = vld [vmem:[%s1305_s2 + $0xb0] sm:$0xff] }
 0x10a   :  { %442 = vmin.xlane.f32.xlu1 %v437_v16  ;;  %v78_v16 = vld [vmem:[%s1305_s2 + $0xb8] sm:$0xff] }
 0x18a   :  { %v199_v17 = vpop.xlane.xlu0 %198 }
 0x18b   :  { %vm203_vm4 = vcmp.le.f32.partialorder %v180_v0, %v199_v17  ;;  %v359_v18 = vpop.xlane.xlu1 %358 }
 0x18c   :  { %vm207_vm5 = vmand %vm189_vm0, %vm203_vm4  ;;  %vm364_vm6 = vcmp.le.f32.partialorder %v181_v1, %v359_v18  ;;  %v773_v18 = vpack.c.bf16 %v78_v16, %v77_v15  ;;  %v69_v16 = vld [vmem:[%s1305_s2 + $0x70] sm:$0xff] }
 0x18d   :  { %v211_v19 = vsel %vm207_vm5, %v970_v54, 256  ;;  %vm368_vm7 = vmand %vm350_vm1, %vm364_vm6 }
 0x18e   :  { %vm215_vm8 = vcmp.lt.s32.totalorder %v211_v19, 256  ;;  %v372_v20 = vsel %vm368_vm7, %v976_v58, 256  ;;  %v278_v21 = vpop.xlane.xlu0 %277 }
 0x18f   :  { %vm675_vm9 = vcmp.gt.s32.totalorder %v372_v20, 256  ;;  %vm282_vm10 = vcmp.le.f32.partialorder %v180_v0, %v278_v21  ;;  %v440_v22 = vpop.xlane.xlu1 %439  ;;  %v1004_v23 = vsel %vm215_vm8, %v211_v19, 256  ;;  %v761_v0 = vpack.c.bf16 %v72_v62, %v71_v61  ;;  %v61_v19 = vld [vmem:[%s1305_s2 + $0x30] sm:$0xff]  ;;  %v79_v61 = vld [vmem:[%s1305_s2 + $0xc0] sm:$0xff] }
 0x190   :  { %vm286_vm11 = vmand %vm266_vm2, %vm282_vm10  ;;  %vm445_vm12 = vcmp.le.f32.partialorder %v181_v1, %v440_v22  ;;  %v218_v24 = vshra.s32 %v1004_v23, 16  ;;  %v1009_v25 = vsel %vm675_vm9, 256, %v372_v20  ;;  %v56_v1 = vld [vmem:[%s1305_s2 + $0x8] sm:$0xff]  ;;  %v62_v20 = vld [vmem:[%s1305_s2 + $0x38] sm:$0xff]  ;;  %v217_v22 = vand.u32 65535, %v1004_v23 }
 0x191   :  { %v290_v26 = vsel %vm286_vm11, %v970_v54, 256  ;;  %vm449_vm13 = vmand %vm429_vm3, %vm445_vm12  ;;  %v378_v30 = vshra.s32 %v1009_v25, 16  ;;  %v763_v4 = vpack.c.bf16 %v56_v1, %v55_v63  ;;  %762 = vmatprep.subr.bf16.mxu1 %v761_v0  ;;  %v775_v21 = vpack.c.bf16 %v62_v20, %v61_v19  ;;  %v64_v63 = vld [vmem:[%s1305_s2 + $0x48] sm:$0xff]  ;;  %v81_v0 = vld [vmem:[%s1305_s2 + $0xd0] sm:$0xff] }
 0x192   :  { %vm294_vm14 = vcmp.lt.s32.totalorder %v290_v26, 256  ;;  %v453_v27 = vsel %vm449_vm13, %v976_v58, 256  ;;  %v281_v28 = vpop.xlane.xlu0 %280  ;;  %v1015_v29 = vcvt.s32.f32 %v218_v24  ;;  %v82_v1 = vld [vmem:[%s1305_s2 + $0xd8] sm:$0xff] }
 0x193   :  { %vm683_vm15 = vcmp.gt.s32.totalorder %v453_v27, 256  ;;  %vm284_vm4 = vcmp.le.f32.partialorder %v182_v8, %v281_v28  ;;  %v202_v31 = vpop.xlane.xlu1 %201  ;;  %v1018_v32 = vsel %vm294_vm14, %v290_v26, 256  ;;  %v1033_v40 = vcvt.s32.f32 %v378_v30  ;;  %764 = vmatpush3.bf16.msra.mxu1 %v763_v4  ;;  %v66_v4 = vld [vmem:[%s1305_s2 + $0x58] sm:$0xff] }
 0x194   :  { %vm288_vm5 = vmand %vm266_vm2, %vm284_vm4  ;;  %vm205_vm6 = vcmp.le.f32.partialorder %v182_v8, %v202_v31  ;;  %221 = vmin.xlane.f32.xlu0 %v1015_v29  ;;  %v297_v33 = vshra.s32 %v1018_v32, 16  ;;  %v1024_v34 = vsel %vm683_vm15, 256, %v453_v27  ;;  %v58_v8 = vld [vmem:[%s1305_s2 + $0x18] sm:$0xff]  ;;  %766 = vmatprep.subr.bf16.mxu1 %v765_v5  ;;  %v219_v26 = vcvt.s32.f32 %v217_v22 }
 0x195   :  { %v292_v35 = vsel %vm288_vm5, %v970_v54, 256  ;;  %vm209_vm7 = vmand %vm189_vm0, %vm205_vm6  ;;  %v459_v36 = vshra.s32 %v1024_v34, 16  ;;  %v767_v11 = vpack.c.bf16 %v58_v8, %v57_v6  ;;  %v296_v27 = vand.u32 65535, %v1018_v32  ;;  %v83_v6 = vld [vmem:[%s1305_s2 + $0xe0] sm:$0xff]  ;;  %v84_v8 = vld [vmem:[%s1305_s2 + $0xe8] sm:$0xff] }
 0x196   :  { %vm310_vm8 = vcmp.lt.s32.totalorder %v292_v35, 256  ;;  %v213_v37 = vsel %vm209_vm7, %v970_v54, 256  ;;  %v362_v38 = vpop.xlane.xlu0 %361  ;;  %v1031_v39 = vcvt.s32.f32 %v297_v33  ;;  %v377_v28 = vand.u32 65535, %v1009_v25 }
 0x197   :  { %vm231_vm9 = vcmp.lt.s32.totalorder %v213_v37, 256  ;;  %vm366_vm10 = vcmp.le.f32.partialorder %v183_v14, %v362_v38  ;;  %v443_v41 = vpop.xlane.xlu1 %442  ;;  %v1035_v42 = vsel %vm310_vm8, %v292_v35, 256  ;;  %v1047_v46 = vcvt.s32.f32 %v459_v36  ;;  %768 = vmatpush3.bf16.msra.mxu1 %v767_v11  ;;  %v68_v11 = vld [vmem:[%s1305_s2 + $0x68] sm:$0xff] }
 0x198   :  { %vm370_vm11 = vmand %vm350_vm1, %vm366_vm10  ;;  %vm447_vm12 = vcmp.le.f32.partialorder %v183_v14, %v443_v41  ;;  %300 = vmin.xlane.f32.xlu1 %v1031_v39  ;;  %381 = vmin.xlane.f32.xlu0 %v1033_v40  ;;  %v313_v43 = vshra.s32 %v1035_v42, 16  ;;  %v1042_v44 = vsel %vm231_vm9, %v213_v37, 256  ;;  %v60_v14 = vld [vmem:[%s1305_s2 + $0x28] sm:$0xff]  ;;  %v298_v35 = vcvt.s32.f32 %v296_v27 }
 0x199   :  { %v374_v45 = vsel %vm370_vm11, %v976_v58, 256  ;;  %vm451_vm13 = vmand %vm429_vm3, %vm447_vm12  ;;  %v234_v51 = vshra.s32 %v1042_v44, 16  ;;  %v771_v17 = vpack.c.bf16 %v60_v14, %v59_v13  ;;  %770 = vmatprep.subr.bf16.mxu1 %v769_v12  ;;  %v379_v36 = vcvt.s32.f32 %v377_v28  ;;  %v85_v13 = vld [vmem:[%s1305_s2 + $0xf0] sm:$0xff]  ;;  %v86_v14 = vld [vmem:[%s1305_s2 + $0xf8] sm:$0xff] }
 0x19a   :  { %vm676_vm14 = vcmp.gt.s32.totalorder %v374_v45, 256  ;;  %v455_v47 = vsel %vm451_vm13, %v976_v58, 256  ;;  %v1050_v48 = vcvt.s32.f32 %v313_v43  ;;  %v458_v23 = vand.u32 65535, %v1024_v34 }
 0x19b   :  { %vm684_vm1 = vcmp.gt.s32.totalorder %v455_v47, 256  ;;  %v1053_v52 = vsel %vm676_vm14, 256, %v374_v45  ;;  %v1060_v56 = vcvt.s32.f32 %v234_v51  ;;  %772 = vmatpush3.bf16.msra.mxu1 %v771_v17  ;;  %v312_v37 = vand.u32 65535, %v1035_v42  ;;  %v70_v17 = vld [vmem:[%s1305_s2 + $0x78] sm:$0xff] }
 0x19c   :  { %462 = vmin.xlane.f32.xlu1 %v1047_v46  ;;  %316 = vmin.xlane.f32.xlu0 %v1050_v48  ;;  %v394_v53 = vshra.s32 %v1053_v52, 16  ;;  %v1058_v55 = vsel %vm684_vm1, 256, %v455_v47  ;;  %v460_v41 = vcvt.s32.f32 %v458_v23  ;;  %v233_v34 = vand.u32 65535, %v1042_v44 }
 0x19d   :  { %v475_v59 = vshra.s32 %v1058_v55, 16  ;;  %774 = vmatprep.subr.bf16.mxu1 %v773_v18  ;;  %v314_v43 = vcvt.s32.f32 %v312_v37  ;;  %v393_v42 = vand.u32 65535, %v1053_v52  ;;  %v474_v44 = vand.u32 65535, %v1058_v55  ;;  %v80_v55 = vld [vmem:[%s1305_s2 + $0xc8] sm:$0xff] }
 0x19e   :  { %v1062_v57 = vcvt.s32.f32 %v394_v53  ;;  %v235_v51 = vcvt.s32.f32 %v233_v34  ;;  %v777_v62 = vpack.c.bf16 %v80_v55, %v79_v61  ;;  %v781_v2 = vpack.c.bf16 %v82_v1, %v81_v0 }
 0x19f   :  { %v1067_v60 = vcvt.s32.f32 %v475_v59  ;;  %776 = vmatpush3.bf16.msra.mxu1 %v775_v21  ;;  %v395_v53 = vcvt.s32.f32 %v393_v42  ;;  %v476_v59 = vcvt.s32.f32 %v474_v44  ;;  %v783_v5 = vpack.c.bf16 %v66_v4, %v65_v3 }
 0x1a0   :  { %237 = vmin.xlane.f32.xlu1 %v1060_v56  ;;  %397 = vmin.xlane.f32.xlu0 %v1062_v57  ;;  %v785_v9 = vpack.c.bf16 %v84_v8, %v83_v6  ;;  %v787_v12 = vpack.c.bf16 %v68_v11, %v67_v10  ;;  %v789_v15 = vpack.c.bf16 %v86_v14, %v85_v13  ;;  %vm263_vm10 = vcmp.eq.s32.totalorder %v970_v54, 0 }
 0x1a1   :  { %778 = vmatprep.subr.bf16.mxu1 %v777_v62  ;;  %v791_v18 = vpack.c.bf16 %v70_v17, %v69_v16  ;;  %vm342_vm13 = vcmp.eq.s32.totalorder %v970_v54, 1  ;;  %vm423_vm14 = vcmp.eq.s32.totalorder %v970_v54, 2 }
 0x1a4   :  { %478 = vmin.xlane.f32.xlu1 %v1067_v60 }
 0x221   :  { %v1119_v24 = vpop.xlane.xlu0 %221 }
 0x222   :  { %vm223_vm3 = vcmp.eq.f32.partialorder %v1015_v29, %v1119_v24  ;;  %v228_v19 = vcvt.f32.s32 %v1119_v24 }
 0x223   :  { %v224_v30 = vsel %vm223_vm3, %v219_v26, inf }
 0x224   :  { %225 = vmin.xlane.f32.xlu0 %v224_v30  ;;  %v229_v26 = vshll.u32 %v228_v19, 16 }
 0x225   :  { %v1125_v31 = vpop.xlane.xlu1 %300  ;;  %v1127_v33 = vpop.xlane.xlu0 %381 }
 0x226   :  { %vm302_vm15 = vcmp.eq.f32.partialorder %v1031_v39, %v1125_v31  ;;  %vm383_vm4 = vcmp.eq.f32.partialorder %v1033_v40, %v1127_v33  ;;  %v307_v20 = vcvt.f32.s32 %v1125_v31  ;;  %v388_v21 = vcvt.f32.s32 %v1127_v33 }
 0x227   :  { %v303_v25 = vsel %vm302_vm15, %v298_v35, inf  ;;  %v384_v29 = vsel %vm383_vm4, %v379_v36, inf  ;;  %vm504_vm4 = vcmp.eq.s32.totalorder %v970_v54, 3 }
 0x228   :  { %304 = vmin.xlane.f32.xlu1 %v303_v25  ;;  %385 = vmin.xlane.f32.xlu0 %v384_v29  ;;  %v308_v25 = vshll.u32 %v307_v20, 16  ;;  %v389_v29 = vshll.u32 %v388_v21, 16 }
 0x229   :  { %v1135_v32 = vpop.xlane.xlu1 %462  ;;  %v1137_v38 = vpop.xlane.xlu0 %316 }
 0x22a   :  { %vm464_vm5 = vcmp.eq.f32.partialorder %v1047_v46, %v1135_v32  ;;  %vm318_vm6 = vcmp.eq.f32.partialorder %v1050_v48, %v1137_v38  ;;  %v469_v28 = vcvt.f32.s32 %v1135_v32  ;;  %v323_v30 = vcvt.f32.s32 %v1137_v38 }
 0x22b   :  { %v465_v39 = vsel %vm464_vm5, %v460_v41, inf  ;;  %v319_v40 = vsel %vm318_vm6, %v314_v43, inf  ;;  %vm586_vm6 = vcmask 31744  }
 0x22c   :  { %466 = vmin.xlane.f32.xlu1 %v465_v39  ;;  %320 = vmin.xlane.f32.xlu0 %v319_v40  ;;  %v470_v32 = vshll.u32 %v469_v28, 16  ;;  %v324_v38 = vshll.u32 %v323_v30, 16 }
 0x22d   :  { %v1145_v45 = vpop.xlane.xlu1 %237  ;;  %v1147_v47 = vpop.xlane.xlu0 %397 }
 0x22e   :  { %vm239_vm7 = vcmp.eq.f32.partialorder %v1060_v56, %v1145_v45  ;;  %vm399_vm8 = vcmp.eq.f32.partialorder %v1062_v57, %v1147_v47  ;;  %v63_v57 = vld [vmem:[%s1305_s2 + $0x40] sm:$0xff]  ;;  %v244_v35 = vcvt.f32.s32 %v1145_v45  ;;  %v404_v36 = vcvt.f32.s32 %v1147_v47 }
 0x22f   :  { %v240_v46 = vsel %vm239_vm7, %v235_v51, inf  ;;  %v400_v48 = vsel %vm399_vm8, %v395_v53, inf }
 0x230   :  { %241 = vmin.xlane.f32.xlu1 %v240_v46  ;;  %401 = vmin.xlane.f32.xlu0 %v400_v48  ;;  %v245_v43 = vshll.u32 %v244_v35, 16  ;;  %v405_v34 = vshll.u32 %v404_v36, 16 }
 0x231   :  { %v479_v52 = vpop.xlane.xlu1 %478 }
 0x232   :  { %vm480_vm9 = vcmp.eq.f32.partialorder %v1067_v60, %v479_v52  ;;  %v779_v60 = vpack.c.bf16 %v64_v63, %v63_v57  ;;  %v485_v23 = vcvt.f32.s32 %v479_v52 }
 0x233   :  { %v481_v56 = vsel %vm480_vm9, %v476_v59, inf }
 0x234   :  { %482 = vmin.xlane.f32.xlu1 %v481_v56  ;;  %780 = vmatpush3.bf16.msra.mxu1 %v779_v60  ;;  %v486_v42 = vshll.u32 %v485_v23, 16 }
 0x235   :  { %782 = vmatprep.subr.bf16.mxu1 %v781_v2 }
 0x238   :  { %784 = vmatpush3.bf16.msra.mxu1 %v783_v5 }
 0x239   :  { %786 = vmatprep.subr.bf16.mxu1 %v785_v9 }
 0x23c   :  { %788 = vmatpush3.bf16.msra.mxu1 %v787_v12 }
 0x23d   :  { %790 = vmatprep.subr.bf16.mxu1 %v789_v15 }
 0x240   :  { %792 = vmatpush3.bf16.msra.mxu1 %v791_v18 }
 0x2b1   :  { %v226_v22 = vpop.xlane.xlu0 %225 }
 0x2b2   :  { %v227_v27 = vcvt.f32.s32 %v226_v22 }
 0x2b4   :  { %v230_v37 = vadd.s32 %v229_v26, %v227_v27 }
 0x2b5   :  { %v305_v24 = vpop.xlane.xlu1 %304  ;;  %v386_v41 = vpop.xlane.xlu0 %385 }
 0x2b6   :  { %vm247_vm11 = vcmp.eq.s32.totalorder %v970_v54, %v230_v37  ;;  %v306_v31 = vcvt.f32.s32 %v305_v24  ;;  %v387_v33 = vcvt.f32.s32 %v386_v41  ;;  %vm248_vm12 = vcmp.eq.s32.totalorder %v976_v58, %v230_v37 }
 0x2b7   :  { %v665_v45 = vsel %vm247_vm11, 1.0, %v821_v7  ;;  %v666_v53 = vsel %vm248_vm12, 1.0, %v821_v7  ;;  %v264_v44 = vsel %vm263_vm10, %v230_v37, 0 }
 0x2b8   :  { %v309_v39 = vadd.s32 %v308_v25, %v306_v31  ;;  %v390_v40 = vadd.s32 %v389_v29, %v387_v33 }
 0x2b9   :  { %v467_v47 = vpop.xlane.xlu1 %466  ;;  %v321_v51 = vpop.xlane.xlu0 %320 }
 0x2ba   :  { %vm326_vm1 = vcmp.eq.s32.totalorder %v970_v54, %v309_v39  ;;  %v673_v46 = vadd.s32 4294967232, %v309_v39  ;;  %vm407_vm3 = vcmp.eq.s32.totalorder %v970_v54, %v390_v40  ;;  %v681_v48 = vadd.s32 4294967168, %v390_v40 }
 0x2bb   :  { %v669_v52 = vsel %vm326_vm1, 1.0, %v821_v7  ;;  %v468_v59 = vcvt.f32.s32 %v467_v47  ;;  %v322_v61 = vcvt.f32.s32 %v321_v51  ;;  %vm327_vm15 = vcmp.eq.s32.totalorder %v976_v58, %v309_v39 }
 0x2bc   :  { %v670_v55 = vsel %vm327_vm15, 1.0, %v821_v7  ;;  %vm408_vm5 = vcmp.eq.s32.totalorder %v976_v58, %v390_v40  ;;  %v338_v56 = vadd.f32 %v669_v52, %v665_v45  ;;  %v677_v62 = vsel %vm407_vm3, 1.0, %v821_v7 }
 0x2bd   :  { %v471_v57 = vadd.s32 %v470_v32, %v468_v59  ;;  %v325_v63 = vadd.s32 %v324_v38, %v322_v61  ;;  %v242_v60 = vpop.xlane.xlu1 %241  ;;  %v402_v0 = vpop.xlane.xlu0 %401  ;;  %v339_v1 = vadd.f32 %v670_v55, %v666_v53  ;;  %v678_v2 = vsel %vm408_vm5, 1.0, %v821_v7 }
 0x2be   :  { %v243_v3 = vcvt.f32.s32 %v242_v60  ;;  %v403_v4 = vcvt.f32.s32 %v402_v0  ;;  %v419_v5 = vadd.f32 %v677_v62, %v338_v56  ;;  %v345_v6 = vsel %vm342_vm13, %v673_v46, %v264_v44 }
 0x2bf   :  { %v689_v8 = vadd.s32 4294967104, %v471_v57  ;;  %vm328_vm7 = vcmp.eq.s32.totalorder %v970_v54, %v325_v63  ;;  %vm329_vm8 = vcmp.eq.s32.totalorder %v976_v58, %v325_v63  ;;  %v674_v9 = vadd.s32 4294967232, %v325_v63 }
 0x2c0   :  { %v671_v10 = vsel %vm328_vm7, 1.0, %v821_v7  ;;  %v672_v11 = vsel %vm329_vm8, 1.0, %v821_v7  ;;  %v246_v12 = vadd.s32 %v245_v43, %v243_v3  ;;  %v406_v13 = vadd.s32 %v405_v34, %v403_v4 }
 0x2c1   :  { %v483_v14 = vpop.xlane.xlu1 %482  ;;  %v420_v15 = vadd.f32 %v678_v2, %v339_v1  ;;  %vm489_vm9 = vcmp.eq.s32.totalorder %v976_v58, %v471_v57  ;;  %vm488_vm11 = vcmp.eq.s32.totalorder %v970_v54, %v471_v57  ;;  %v426_v16 = vsel %vm423_vm14, %v681_v48, %v345_v6 }
 0x2c2   :  { %vm249_vm12 = vcmp.eq.s32.totalorder %v970_v54, %v246_v12  ;;  %vm250_vm1 = vcmp.eq.s32.totalorder %v976_v58, %v246_v12  ;;  %vm409_vm3 = vcmp.eq.s32.totalorder %v970_v54, %v406_v13  ;;  %vm410_vm15 = vcmp.eq.s32.totalorder %v976_v58, %v406_v13 }
 0x2c3   :  { %v667_v17 = vsel %vm249_vm12, 1.0, %v821_v7  ;;  %v668_v18 = vsel %vm250_vm1, 1.0, %v821_v7  ;;  %v682_v19 = vadd.s32 4294967168, %v406_v13  ;;  %v484_v20 = vcvt.f32.s32 %v483_v14 }
 0x2c4   :  { %v686_v21 = vsel %vm489_vm9, 1.0, %v821_v7  ;;  %v685_v22 = vsel %vm488_vm11, 1.0, %v821_v7  ;;  %v341_v26 = vadd.f32 %v672_v11, %v668_v18  ;;  %v680_v27 = vsel %vm410_vm15, 1.0, %v821_v7 }
 0x2c5   :  { %v487_v28 = vadd.s32 %v486_v42, %v484_v20  ;;  %v501_v30 = vadd.f32 %v686_v21, %v420_v15  ;;  %v500_v35 = vadd.f32 %v685_v22, %v419_v5  ;;  %v340_v36 = vadd.f32 %v671_v10, %v667_v17 }
 0x2c6   :  { %v422_v23 = vadd.f32 %v680_v27, %v341_v26  ;;  %v679_v37 = vsel %vm409_vm3, 1.0, %v821_v7  ;;  %v265_v25 = vsel %vm263_vm10, %v246_v12, 0  ;;  %v507_v29 = vsel %vm504_vm4, %v689_v8, %v426_v16 }
 0x2c7   :  { %v690_v24 = vadd.s32 4294967104, %v487_v28  ;;  %573 = vmatprep.mubr.f32.mxu1 %v501_v30  ;;  %vm491_vm5 = vcmp.eq.s32.totalorder %v976_v58, %v487_v28  ;;  %v421_v41 = vadd.f32 %v679_v37, %v340_v36  ;;  %vm490_vm7 = vcmp.eq.s32.totalorder %v970_v54, %v487_v28  ;;  %587 = vst.msk [vmem:[%s1308_s5] sm:$0xff] %vm586_vm6, %v507_v29 }
 0x2c8   :  { %574 = vmatmul.mubr.f32.vlgmr.msra.gmra.mrb[0].mxu1 %v500_v35  ;;  %v688_v31 = vsel %vm491_vm5, 1.0, %v821_v7  ;;  %v687_v33 = vsel %vm490_vm7, 1.0, %v821_v7  ;;  %v346_v32 = vsel %vm342_vm13, %v674_v9, %v265_v25  ;;  %vm615_vm9 = vcmp.lt.s32.totalorder %v970_v54, 32 }
 0x2c9   :  { %v503_v38 = vadd.f32 %v688_v31, %v422_v23  ;;  %v502_v43 = vadd.f32 %v687_v33, %v421_v41  ;;  %v427_v58 = vsel %vm423_vm14, %v682_v19, %v346_v32  ;;  %vm627_vm11 = vcmp.lt.s32.totalorder %v970_v54, 96 }
 0x2ca   :  { %v508_v34 = vsel %vm504_vm4, %v690_v24, %v427_v58  ;;  %vm633_vm12 = vcmp.ge.s32.totalorder %v970_v54, 96  ;;  %vm628_vm1 = vmand %vm266_vm2, %vm627_vm11 }
 0x2cb   :  { %578 = vmatprep.mubr.f32.mxu1 %v503_v38  ;;  %588 = vst.msk [vmem:[%s1308_s5 + $0x8] sm:$0xff] %vm586_vm6, %v508_v34  ;;  %vm621_vm6 = vcmp.ge.s32.totalorder %v970_v54, 32  ;;  %s822_s5 = smov [#allocation2]  }
 0x2cc   :  { %579 = vmatmul.mubr.f32.gmra.mrb[2].mxu1 %v502_v43  ;;  %vm622_vm8 = vmand %vm621_vm6, %vm189_vm0  ;;  %s646_s29 = sshll.u32 %s822_s5, 4  ;;  %s647_s29 = int_to_ptr.vmem [resolvable:$true] %s646_s29 }
 0x2cd   :  { %s797_s30 = scalar_lea.vmem %s647_s29, 256  ;;  %p802_p1 = scmp.lt.s32.totalorder %s647_s29, %s647_s29 }
 0x2ce   :  { %p798_p0 = scmp.ne.s32.totalorder %s647_s29, %s797_s30  ;;  %p803_p2 = scmp.lt.s32.totalorder %s797_s30, %s797_s30 }
 0x2d0   :  { %p804_p3 = por %p803_p2, %p802_p1 }
 0x2d2   :  { %p805_p4 = pnand %p804_p3, %p798_p0 }
 0x39b   :  { %v723_v42 = vpop.f32.mrb[0].mxu1 }
 0x39c   :  { %v724_v7 = vpop.f32.mrb[1].mxu1 }
 0x39d   :  { %v725_v39 = vadd.f32 %v724_v7, %v723_v42 }
 0x39f   :  { %584 = vst [vmem:[#allocation2] sm:$0xff] %v725_v39  ;;  %v726_v40 = vpop.f32.mrb[2].mxu1  ;;  %v598_v47 = vsub.f32 %v960_v49, %v725_v39 }
 0x3a0   :  { %v727_v45 = vpop.f32.mrb[3].mxu1 }
 0x3a1   :  { %v728_v51 = vadd.f32 %v727_v45, %v726_v40  ;;  %v600_v44 = vmul.f32 %v598_v47, %v598_v47 }
 0x3a3   :  { %585 = vst [vmem:[#allocation2 + $0x8] sm:$0xff] %v728_v51  ;;  %v599_v53 = vsub.f32 %v967_v50, %v728_v51 }
 0x3a5   :  { %v601_v46 = vmul.f32 %v599_v53, %v599_v53 }
 0x3a7   :  { %v608_v48 = vadd.f32 %v601_v46, %v600_v44 }
 0x3a9   :  { %v609_v52 = vrot.slane %v608_v48, 4 }
 0x3ab   :  { %v610_v59 = vadd.f32 %v609_v52, %v608_v48 }
 0x3ad   :  { %v611_v61 = vrot.slane %v610_v59, 2 }
 0x3af   :  { %v612_v55 = vadd.f32 %v611_v61, %v610_v59 }
 0x3b1   :  { %v613_v56 = vrot.slane %v612_v55, 1 }
 0x3b3   :  { %v614_v49 = vadd.f32 %v613_v56, %v612_v55 }
 0x3b5   :  { %v623_v62 = vsel %vm622_vm8, %v614_v49, 0.0  ;;  %v617_v50 = vsel %vm615_vm9, %v614_v49, 0.0  ;;  %v635_v57 = vsel %vm633_vm12, %v614_v49, 0.0  ;;  %v629_v63 = vsel %vm628_vm1, %v614_v49, 0.0 }
 0x3b6   :  { %624 = vadd.xlane.f32.xlu1 %v623_v62  ;;  %618 = vadd.xlane.f32.xlu0 %v617_v50 }
 0x3ba   :  { %636 = vadd.xlane.f32.xlu1 %v635_v57  ;;  %630 = vadd.xlane.f32.xlu0 %v629_v63 }
 0x3bb   :  { %808 = shalt.err (!%p805_p4)
}
 0x3bc   :  { %s809_s9 = scalar_lea.hbm %s1307_s4, 256 }
 0x3bd   :  { %p810_p5 = scmp.ne.s32.totalorder %s1307_s4, %s809_s9  ;;  %p813_p6 = scmp.lt.u32.totalorder %s809_s9, %s1307_s4 }
 0x3bf   :  { %p815_p7 = pnand %p813_p6, %p810_p5 }
 0x3c1   :  { %818 = shalt.err (!%p815_p7)
}
 0x3c2   :  { %s823_s14 = smov 128   ;;  %s824_s15 = smov 8   ;;  %vm639_vm0 = vcmask 24576  }
 0x3c3   :  { %652 = dma.vmem_to_hbm [thread:$0]  %s647_s29, 256, %s1307_s4, [#allocation3], %s823_s14, %s823_s14, %s824_s15  }
 0x443   :  { %v625_v60 = vpop.xlane.xlu1 %624  ;;  %v619_v0 = vpop.xlane.xlu0 %618 }
 0x444   :  { %v620_v1 = vsel %vm263_vm10, %v619_v0, 0.0 }
 0x445   :  { %v626_v2 = vsel %vm342_vm13, %v625_v60, %v620_v1 }
 0x447   :  { %v637_v3 = vpop.xlane.xlu1 %636  ;;  %v631_v4 = vpop.xlane.xlu0 %630 }
 0x448   :  { %v632_v5 = vsel %vm423_vm14, %v631_v4, %v626_v2 }
 0x449   :  { %v638_v6 = vsel %vm504_vm4, %v637_v3, %v632_v5 }
 0x44a   :  { %640 = vst.msk [vmem:[%s1309_s6] sm:$0x1] %vm639_vm0, %v638_v6 }
 0x44b   :  { %819 = dma.done.wait [#allocation3], 256  }
 0x44c   :  { %820 = vsyncadd [#allocation3], 4294967040 }
 0x44d   :  { %664 = vsyncpa [#allocation3], 1 }

</bundles_post_ra>
